<compile_context>
chip_gen: v5e
topology: v5e:2x2
jax: 0.10.0
libtpu: 0.0.40
codegen_flags: <defaults>
</compile_context>

<pallas_src>
import functools

import jax
import jax.numpy as jnp
from jax.experimental import pallas as pl
from jax.experimental.pallas import tpu as pltpu


def _linear_kernel(x_ref, wt_ref, b_ref, o_ref):
    # x_ref:  (tm, K)       VMEM tile of node features
    # wt_ref: (K, O_pad)    full (transposed, lane-padded) weight, resident across grid
    # b_ref:  (1, O_pad)    bias row (f32)
    # o_ref:  (tm, O_pad)   output tile (lane-dense)
    acc = jnp.dot(x_ref[...], wt_ref[...], preferred_element_type=jnp.float32)
    o_ref[...] = (acc + b_ref[...]).astype(o_ref.dtype)


def _round_up(x, m):
    return (x + m - 1) // m * m


@functools.partial(jax.jit, static_argnames=("tm", "compute_dtype"))
def logistic_regression_forward(feature, weight, bias, *, tm=1024, compute_dtype=None):
    """y = feature @ weight.T + bias  via a Pallas TPU kernel.

    feature: [N, feat_dim] or [1, N, feat_dim] (leading 1 squeezed, as in
             squeeze_first_dimension).
    weight:  [output_dim, feat_dim]  (PyTorch nn.Linear convention)
    bias:    [output_dim]
    compute_dtype: optional dtype (e.g. jnp.bfloat16) for the matmul operands;
             accumulation is always f32 and the result is returned in the
             feature's original dtype.
    returns: [N, output_dim]
    """
    if feature.ndim == 3 and feature.shape[0] == 1:
        feature = feature[0]
    N, K = feature.shape
    O = weight.shape[0]
    out_dtype = feature.dtype

    if compute_dtype is not None:
        feature = feature.astype(compute_dtype)
        weight = weight.astype(compute_dtype)

    # Lane-dense output: pad O up to a multiple of 128 (pads only weight/bias).
    O_pad = _round_up(O, 128)
    wt = weight.T  # [K, O]
    if O_pad != O:
        wt = jnp.pad(wt, ((0, 0), (0, O_pad - O)))
        b2 = jnp.pad(bias, (0, O_pad - O)).reshape(1, O_pad)
    else:
        b2 = bias.reshape(1, O_pad)
    b2 = b2.astype(jnp.float32)

    in_bytes = jnp.dtype(feature.dtype).itemsize
    w_bytes = jnp.dtype(wt.dtype).itemsize
    out_bytes = jnp.dtype(out_dtype).itemsize
    weight_bytes = K * O_pad * w_bytes + O_pad * 4
    total_bytes = N * K * in_bytes + N * O_pad * out_bytes + weight_bytes

    cost = pl.CostEstimate(
        flops=2 * N * K * O_pad,
        transcendentals=0,
        bytes_accessed=N * K * in_bytes + K * O_pad * w_bytes + N * O_pad * out_bytes,
    )
    compiler_params = pltpu.CompilerParams(dimension_semantics=("parallel",))

    # ---- Single-block fast path: whole problem resident in VMEM, one grid step.
    SINGLE_BLOCK_LIMIT = 4 * 1024 * 1024  # bytes (well inside every chip's budget)
    if total_bytes <= SINGLE_BLOCK_LIMIT:
        out = pl.pallas_call(
            _linear_kernel,
            out_shape=jax.ShapeDtypeStruct((N, O_pad), out_dtype),
            grid_spec=pltpu.PrefetchScalarGridSpec(
                num_scalar_prefetch=0,
                grid=(1,),
                in_specs=[
                    pl.BlockSpec((N, K), lambda i: (0, 0)),
                    pl.BlockSpec((K, O_pad), lambda i: (0, 0)),
                    pl.BlockSpec((1, O_pad), lambda i: (0, 0)),
                ],
                out_specs=pl.BlockSpec((N, O_pad), lambda i: (0, 0)),
            ),
            compiler_params=compiler_params,
            cost_estimate=cost,
        )(feature, wt, b2)
        return out[:, :O] if O_pad != O else out

    # ---- Tiled path: large row tiles, ragged last tile handled by Pallas masking.
    # Clamp tm so double-buffered tiles fit a conservative VMEM budget that is
    # safe even for v5e's 16 MiB scoped default and v7x's smaller VMEM.
    VMEM_BUDGET = 12 * 1024 * 1024
    per_row = 2 * (K * in_bytes + O_pad * out_bytes)   # double-buffered x + out rows
    budget_rows = max(8, (VMEM_BUDGET - 2 * weight_bytes) // per_row)
    tm = int(min(tm, budget_rows))
    tm = max(8, (tm // 8) * 8)
    grid = pl.cdiv(N, tm)

    out = pl.pallas_call(
        _linear_kernel,
        out_shape=jax.ShapeDtypeStruct((N, O_pad), out_dtype),
        grid_spec=pltpu.PrefetchScalarGridSpec(
            num_scalar_prefetch=0,
            grid=(grid,),
            in_specs=[
                pl.BlockSpec((tm, K), lambda i: (i, 0)),       # feature row tile
                pl.BlockSpec((K, O_pad), lambda i: (0, 0)),    # full weight (resident)
                pl.BlockSpec((1, O_pad), lambda i: (0, 0)),    # bias (resident)
            ],
            out_specs=pl.BlockSpec((tm, O_pad), lambda i: (i, 0)),
        ),
        compiler_params=compiler_params,
        cost_estimate=cost,
    )(feature, wt, b2)
    return out[:, :O] if O_pad != O else out


def init_params(feat_dim, output_dim, key):
    """Deterministic synthetic init matching nn.Linear parameter shapes."""
    k_w, k_b = jax.random.split(key)
    bound = 1.0 / jnp.sqrt(feat_dim)
    weight = jax.random.uniform(k_w, (output_dim, feat_dim), jnp.float32,
                                minval=-bound, maxval=bound)
    bias = jax.random.uniform(k_b, (output_dim,), jnp.float32,
                              minval=-bound, maxval=bound)
    return weight, bias


# TODO(synk): the query_edges branch (gather + concat + second Linear) is dead code in
# the reference module (query_edges is always None), so it is not implemented here.


if __name__ == "__main__":
    key = jax.random.PRNGKey(0)
    k_x1, k_x2, k_p = jax.random.split(key, 3)

    feat_dim, output_dim = 128, 64
    weight, bias = init_params(feat_dim, output_dim, k_p)

    # Test 1: small N with leading singleton dim -> single-block fast path (f32).
    N1 = 256
    feature1 = jax.random.normal(k_x1, (1, N1, feat_dim), jnp.float32)
    out1 = jax.block_until_ready(logistic_regression_forward(feature1, weight, bias))
    ref1 = feature1[0] @ weight.T + bias
    assert out1.shape == (N1, output_dim), out1.shape
    assert jnp.allclose(out1, ref1, atol=1e-3, rtol=1e-3), "mismatch (single-block path)"

    # Test 2: larger, ragged N -> tiled path with a masked partial last row tile (f32).
    N2 = 4000
    feature2 = jax.random.normal(k_x2, (N2, feat_dim), jnp.float32)
    out2 = jax.block_until_ready(
        logistic_regression_forward(feature2, weight, bias, tm=1024))
    ref2 = feature2 @ weight.T + bias
    assert out2.shape == (N2, output_dim), out2.shape
    assert jnp.allclose(out2, ref2, atol=1e-3, rtol=1e-3), "mismatch (tiled path)"

    # Test 3: bf16 operands / f32 accumulation (v6e/v7x fast path), loose tolerance.
    out3 = jax.block_until_ready(
        logistic_regression_forward(feature2, weight, bias, tm=1024,
                                    compute_dtype=jnp.bfloat16))
    assert out3.shape == (N2, output_dim), out3.shape
    assert jnp.allclose(out3, ref2, atol=1e-1, rtol=5e-2), "mismatch (bf16 path)"

    print("KERNEL_OK")
</pallas_src>

<mosaic_0001>
module attributes {stable_mosaic.version = 11 : i64} {
  func.func @_linear_kernel(%arg0: i32, %arg1: memref<256x128xf32, #tpu.memory_space<vmem>>, %arg2: memref<128x128xf32, #tpu.memory_space<vmem>>, %arg3: memref<1x128xf32, #tpu.memory_space<vmem>>, %arg4: memref<256x128xf32, #tpu.memory_space<vmem>>) attributes {dimension_semantics = [#tpu.dimension_semantics<parallel>], iteration_bounds = array<i64: 1>, scalar_prefetch = 0 : i64, scratch_operands = 0 : i64, tpu.core_type = #tpu.core_type<tc>, window_params = [{pipeline_mode = #tpu.pipeline_mode<synchronous>, transform_indices = @transform_0, window_bounds = array<i64: 256, 128>}, {pipeline_mode = #tpu.pipeline_mode<synchronous>, transform_indices = @transform_1, window_bounds = array<i64: 128, 128>}, {pipeline_mode = #tpu.pipeline_mode<synchronous>, transform_indices = @transform_2, window_bounds = array<i64: 1, 128>}, {pipeline_mode = #tpu.pipeline_mode<synchronous>, transform_indices = @transform_3, window_bounds = array<i64: 256, 128>}]} {
    %c0 = arith.constant 0 : index
    %c0_0 = arith.constant 0 : index
    %0 = vector.load %arg1[%c0, %c0_0] : memref<256x128xf32, #tpu.memory_space<vmem>>, vector<256x128xf32>
    %c0_1 = arith.constant 0 : index
    %c0_2 = arith.constant 0 : index
    %1 = vector.load %arg2[%c0_1, %c0_2] : memref<128x128xf32, #tpu.memory_space<vmem>>, vector<128x128xf32>
    %cst = arith.constant dense<0.000000e+00> : vector<256x128xf32>
    %2 = tpu.matmul %0, %1, %cst {dimension_numbers = #tpu.dot_dimension_numbers<[1], [0], [0], [1], [0, 0, 1, 1], [], []>} : vector<256x128xf32>, vector<128x128xf32>, vector<256x128xf32> -> vector<256x128xf32>
    %c0_3 = arith.constant 0 : index
    %c0_4 = arith.constant 0 : index
    %3 = vector.load %arg3[%c0_3, %c0_4] : memref<1x128xf32, #tpu.memory_space<vmem>>, vector<1x128xf32>
    %4 = vector.broadcast %3 : vector<1x128xf32> to vector<256x128xf32>
    %5 = arith.addf %2, %4 : vector<256x128xf32>
    %c0_5 = arith.constant 0 : index
    %c0_6 = arith.constant 0 : index
    %6 = vector.load %arg4[%c0_5, %c0_6] : memref<256x128xf32, #tpu.memory_space<vmem>>, vector<256x128xf32>
    tpu.vector_store %arg4[%c0_5, %c0_6], %5 {strides = array<i32>} : memref<256x128xf32, #tpu.memory_space<vmem>>, vector<256x128xf32>,
    return
  }
  func.func @transform_0(%arg0: i32) -> (i32, i32) {
    %c0_i32 = arith.constant 0 : i32
    %c0_i32_0 = arith.constant 0 : i32
    %c0_i32_1 = arith.constant 0 : i32
    return %c0_i32, %c0_i32_0 : i32, i32
  }
  func.func @transform_1(%arg0: i32) -> (i32, i32) {
    %c0_i32 = arith.constant 0 : i32
    %c0_i32_0 = arith.constant 0 : i32
    %c0_i32_1 = arith.constant 0 : i32
    return %c0_i32, %c0_i32_0 : i32, i32
  }
  func.func @transform_2(%arg0: i32) -> (i32, i32) {
    %c0_i32 = arith.constant 0 : i32
    %c0_i32_0 = arith.constant 0 : i32
    %c0_i32_1 = arith.constant 0 : i32
    return %c0_i32, %c0_i32_0 : i32, i32
  }
  func.func @transform_3(%arg0: i32) -> (i32, i32) {
    %c0_i32 = arith.constant 0 : i32
    %c0_i32_0 = arith.constant 0 : i32
    %c0_i32_1 = arith.constant 0 : i32
    return %c0_i32, %c0_i32_0 : i32, i32
  }
}

</mosaic_0001>

<bundles_post_ra>
// kernel: logistic_regression_forward.1
= control target key start
LH: loop header
LB: loop body
LE: loop exit
PB: predicated region body
PF: predicated region fallthrough
CT: control target
= control target key end

     0   :  { %s561_s1 = inlined_call_operand.vmem [shape: f32[128,128], index: 1, kind: input, shape index: {}]   ;;  %s562_s2 = inlined_call_operand.vmem [shape: f32[1,128], index: 2, kind: input, shape index: {}]   ;;  %s563_s0 = inlined_call_operand.vmem [shape: f32[256,128], index: 0, kind: input, shape index: {}]   ;;  %s564_s3 = inlined_call_operand.vmem [shape: f32[256,128], index: 3, kind: output, shape index: {}]  }
   0x1   :  { %v61_v0 = vld [vmem:[%s561_s1 + $0x78] sm:$0xff]  ;;  %v60_v1 = vld [vmem:[%s561_s1 + $0x70] sm:$0xff]  ;;  %v59_v2 = vld [vmem:[%s561_s1 + $0x68] sm:$0xff] }
   0x2   :  { %216 = vmatpush.msra.mxu2 %v61_v0  ;;  %217 = vmatpush.msra.mxu3 %v61_v0  ;;  %v58_v3 = vld [vmem:[%s561_s1 + $0x60] sm:$0xff]  ;;  %v57_v4 = vld [vmem:[%s561_s1 + $0x58] sm:$0xff]  ;;  %v56_v5 = vld [vmem:[%s561_s1 + $0x50] sm:$0xff] }
   0x3   :  { %66 = vmatpush.msra.mxu0 %v61_v0  ;;  %215 = vmatpush.msra.mxu1 %v61_v0  ;;  %v55_v6 = vld [vmem:[%s561_s1 + $0x48] sm:$0xff]  ;;  %v54_v7 = vld [vmem:[%s561_s1 + $0x40] sm:$0xff]  ;;  %v53_v8 = vld [vmem:[%s561_s1 + $0x38] sm:$0xff] }
   0x4   :  { %219 = vmatpush.msra.mxu2 %v60_v1  ;;  %220 = vmatpush.msra.mxu3 %v60_v1  ;;  %v52_v9 = vld [vmem:[%s561_s1 + $0x30] sm:$0xff]  ;;  %v51_v10 = vld [vmem:[%s561_s1 + $0x28] sm:$0xff]  ;;  %v50_v11 = vld [vmem:[%s561_s1 + $0x20] sm:$0xff] }
   0x5   :  { %67 = vmatpush.msra.mxu0 %v60_v1  ;;  %218 = vmatpush.msra.mxu1 %v60_v1  ;;  %v49_v12 = vld [vmem:[%s561_s1 + $0x18] sm:$0xff]  ;;  %v48_v13 = vld [vmem:[%s561_s1 + $0x10] sm:$0xff]  ;;  %v47_v14 = vld [vmem:[%s561_s1 + $0x8] sm:$0xff] }
   0x6   :  { %222 = vmatpush.msra.mxu2 %v59_v2  ;;  %223 = vmatpush.msra.mxu3 %v59_v2  ;;  %v46_v15 = vld [vmem:[%s561_s1] sm:$0xff]  ;;  %v31_v20 = vld [vmem:[%s563_s0 + $0x88] sm:$0xff]  ;;  %v32_v24 = vld [vmem:[%s563_s0 + $0x90] sm:$0xff] }
   0x7   :  { %68 = vmatpush.msra.mxu0 %v59_v2  ;;  %221 = vmatpush.msra.mxu1 %v59_v2  ;;  %v30_v16 = vld [vmem:[%s563_s0 + $0x80] sm:$0xff]  ;;  %v39_v21 = vld [vmem:[%s563_s0 + $0xc8] sm:$0xff]  ;;  %v40_v25 = vld [vmem:[%s563_s0 + $0xd0] sm:$0xff] }
   0x8   :  { %225 = vmatpush.msra.mxu2 %v58_v3  ;;  %226 = vmatpush.msra.mxu3 %v58_v3  ;;  %v38_v17 = vld [vmem:[%s563_s0 + $0xc0] sm:$0xff]  ;;  %v15_v22 = vld [vmem:[%s563_s0 + $0x8] sm:$0xff]  ;;  %v16_v26 = vld [vmem:[%s563_s0 + $0x10] sm:$0xff] }
   0x9   :  { %69 = vmatpush.msra.mxu0 %v58_v3  ;;  %224 = vmatpush.msra.mxu1 %v58_v3  ;;  %v14_v18 = vld [vmem:[%s563_s0] sm:$0xff]  ;;  %v23_v23 = vld [vmem:[%s563_s0 + $0x48] sm:$0xff]  ;;  %v24_v27 = vld [vmem:[%s563_s0 + $0x50] sm:$0xff] }
   0xa   :  { %228 = vmatpush.msra.mxu2 %v57_v4  ;;  %229 = vmatpush.msra.mxu3 %v57_v4  ;;  %v22_v19 = vld [vmem:[%s563_s0 + $0x40] sm:$0xff]  ;;  %v33_v28 = vld [vmem:[%s563_s0 + $0x98] sm:$0xff]  ;;  %v35_v36 = vld [vmem:[%s563_s0 + $0xa8] sm:$0xff] }
   0xb   :  { %70 = vmatpush.msra.mxu0 %v57_v4  ;;  %227 = vmatpush.msra.mxu1 %v57_v4  ;;  %v41_v29 = vld [vmem:[%s563_s0 + $0xd8] sm:$0xff]  ;;  %v34_v32 = vld [vmem:[%s563_s0 + $0xa0] sm:$0xff]  ;;  %v43_v37 = vld [vmem:[%s563_s0 + $0xe8] sm:$0xff] }
   0xc   :  { %231 = vmatpush.msra.mxu2 %v56_v5  ;;  %232 = vmatpush.msra.mxu3 %v56_v5  ;;  %v17_v30 = vld [vmem:[%s563_s0 + $0x18] sm:$0xff]  ;;  %v42_v33 = vld [vmem:[%s563_s0 + $0xe0] sm:$0xff]  ;;  %v19_v38 = vld [vmem:[%s563_s0 + $0x28] sm:$0xff] }
   0xd   :  { %71 = vmatpush.msra.mxu0 %v56_v5  ;;  %230 = vmatpush.msra.mxu1 %v56_v5  ;;  %v25_v31 = vld [vmem:[%s563_s0 + $0x58] sm:$0xff]  ;;  %v18_v34 = vld [vmem:[%s563_s0 + $0x20] sm:$0xff]  ;;  %v27_v39 = vld [vmem:[%s563_s0 + $0x68] sm:$0xff] }
   0xe   :  { %234 = vmatpush.msra.mxu2 %v55_v6  ;;  %235 = vmatpush.msra.mxu3 %v55_v6  ;;  %v26_v35 = vld [vmem:[%s563_s0 + $0x60] sm:$0xff]  ;;  %v36_v40 = vld [vmem:[%s563_s0 + $0xb0] sm:$0xff]  ;;  %v37_v44 = vld [vmem:[%s563_s0 + $0xb8] sm:$0xff] }
   0xf   :  { %72 = vmatpush.msra.mxu0 %v55_v6  ;;  %233 = vmatpush.msra.mxu1 %v55_v6  ;;  %v44_v41 = vld [vmem:[%s563_s0 + $0xf0] sm:$0xff]  ;;  %v45_v45 = vld [vmem:[%s563_s0 + $0xf8] sm:$0xff]  ;;  %v431_v48 = vld [vmem:[%s562_s2] ss:$0 sm:$0xff] }
  0x10   :  { %237 = vmatpush.msra.mxu2 %v54_v7  ;;  %238 = vmatpush.msra.mxu3 %v54_v7  ;;  %v20_v42 = vld [vmem:[%s563_s0 + $0x30] sm:$0xff]  ;;  %v21_v46 = vld [vmem:[%s563_s0 + $0x38] sm:$0xff] }
  0x11   :  { %73 = vmatpush.msra.mxu0 %v54_v7  ;;  %236 = vmatpush.msra.mxu1 %v54_v7  ;;  %v28_v43 = vld [vmem:[%s563_s0 + $0x70] sm:$0xff]  ;;  %v29_v47 = vld [vmem:[%s563_s0 + $0x78] sm:$0xff] }
  0x12   :  { %240 = vmatpush.msra.mxu2 %v53_v8  ;;  %241 = vmatpush.msra.mxu3 %v53_v8 }
  0x13   :  { %74 = vmatpush.msra.mxu0 %v53_v8  ;;  %239 = vmatpush.msra.mxu1 %v53_v8 }
  0x14   :  { %243 = vmatpush.msra.mxu2 %v52_v9  ;;  %244 = vmatpush.msra.mxu3 %v52_v9 }
  0x15   :  { %75 = vmatpush.msra.mxu0 %v52_v9  ;;  %242 = vmatpush.msra.mxu1 %v52_v9 }
  0x16   :  { %246 = vmatpush.msra.mxu2 %v51_v10  ;;  %247 = vmatpush.msra.mxu3 %v51_v10 }
  0x17   :  { %76 = vmatpush.msra.mxu0 %v51_v10  ;;  %245 = vmatpush.msra.mxu1 %v51_v10 }
  0x18   :  { %249 = vmatpush.msra.mxu2 %v50_v11  ;;  %250 = vmatpush.msra.mxu3 %v50_v11 }
  0x19   :  { %77 = vmatpush.msra.mxu0 %v50_v11  ;;  %248 = vmatpush.msra.mxu1 %v50_v11 }
  0x1a   :  { %252 = vmatpush.msra.mxu2 %v49_v12  ;;  %253 = vmatpush.msra.mxu3 %v49_v12 }
  0x1b   :  { %78 = vmatpush.msra.mxu0 %v49_v12  ;;  %251 = vmatpush.msra.mxu1 %v49_v12 }
  0x1c   :  { %255 = vmatpush.msra.mxu2 %v48_v13  ;;  %256 = vmatpush.msra.mxu3 %v48_v13 }
  0x1d   :  { %79 = vmatpush.msra.mxu0 %v48_v13  ;;  %254 = vmatpush.msra.mxu1 %v48_v13 }
  0x1e   :  { %258 = vmatpush.msra.mxu2 %v47_v14  ;;  %259 = vmatpush.msra.mxu3 %v47_v14 }
  0x1f   :  { %80 = vmatpush.msra.mxu0 %v47_v14  ;;  %257 = vmatpush.msra.mxu1 %v47_v14 }
  0x20   :  { %261 = vmatpush.msra.mxu2 %v46_v15  ;;  %262 = vmatpush.msra.mxu3 %v46_v15 }
  0x21   :  { %130 = vmatmul.f32.vlgmr.msra.gmra.mxu2 %v30_v16  ;;  %154 = vmatmul.f32.vlgmr.msra.gmra.mxu3 %v38_v17 }
  0x22   :  { %81 = vmatpush.msra.mxu0 %v46_v15  ;;  %260 = vmatpush.msra.mxu1 %v46_v15 }
  0x23   :  { %82 = vmatmul.f32.vlgmr.msra.gmra.mxu0 %v14_v18  ;;  %106 = vmatmul.f32.vlgmr.msra.gmra.mxu1 %v22_v19 }
  0x29   :  { %133 = vmatmul.f32.gmra.mxu2 %v31_v20  ;;  %157 = vmatmul.f32.gmra.mxu3 %v39_v21 }
  0x2b   :  { %85 = vmatmul.f32.gmra.mxu0 %v15_v22  ;;  %109 = vmatmul.f32.gmra.mxu1 %v23_v23 }
  0x31   :  { %136 = vmatmul.f32.gmra.mxu2 %v32_v24  ;;  %160 = vmatmul.f32.gmra.mxu3 %v40_v25 }
  0x33   :  { %88 = vmatmul.f32.gmra.mxu0 %v16_v26  ;;  %112 = vmatmul.f32.gmra.mxu1 %v24_v27 }
  0x39   :  { %139 = vmatmul.f32.gmra.mxu2 %v33_v28  ;;  %163 = vmatmul.f32.gmra.mxu3 %v41_v29 }
  0x3b   :  { %91 = vmatmul.f32.gmra.mxu0 %v17_v30  ;;  %115 = vmatmul.f32.gmra.mxu1 %v25_v31 }
  0x41   :  { %142 = vmatmul.f32.gmra.mxu2 %v34_v32  ;;  %166 = vmatmul.f32.gmra.mxu3 %v42_v33 }
  0x43   :  { %94 = vmatmul.f32.gmra.mxu0 %v18_v34  ;;  %118 = vmatmul.f32.gmra.mxu1 %v26_v35 }
  0x49   :  { %145 = vmatmul.f32.gmra.mxu2 %v35_v36  ;;  %169 = vmatmul.f32.gmra.mxu3 %v43_v37 }
  0x4b   :  { %97 = vmatmul.f32.gmra.mxu0 %v19_v38  ;;  %121 = vmatmul.f32.gmra.mxu1 %v27_v39 }
  0x51   :  { %148 = vmatmul.f32.gmra.mxu2 %v36_v40  ;;  %172 = vmatmul.f32.gmra.mxu3 %v44_v41 }
  0x53   :  { %100 = vmatmul.f32.gmra.mxu0 %v20_v42  ;;  %124 = vmatmul.f32.gmra.mxu1 %v28_v43 }
  0x59   :  { %151 = vmatmul.f32.gmra.mxu2 %v37_v44  ;;  %175 = vmatmul.f32.gmra.mxu3 %v45_v45 }
  0x5b   :  { %103 = vmatmul.f32.gmra.mxu0 %v21_v46  ;;  %127 = vmatmul.f32.gmra.mxu1 %v29_v47 }
  0xa0   :  { %v83_v49 = vpop.f32.mrf.mxu0  ;;  %v107_v50 = vpop.f32.mrf.mxu1 }
  0xa1   :  { %v84_v51 = vadd.f32 %v431_v48, %v83_v49  ;;  %v108_v52 = vadd.f32 %v431_v48, %v107_v50 }
  0xa3   :  { %179 = vst [vmem:[%s564_s3] sm:$0xff] %v84_v51 }
  0xa4   :  { %187 = vst [vmem:[%s564_s3 + $0x40] sm:$0xff] %v108_v52  ;;  %v131_v53 = vpop.f32.mrf.mxu2  ;;  %v155_v54 = vpop.f32.mrf.mxu3 }
  0xa5   :  { %v132_v55 = vadd.f32 %v431_v48, %v131_v53  ;;  %v156_v56 = vadd.f32 %v431_v48, %v155_v54 }
  0xa7   :  { %195 = vst [vmem:[%s564_s3 + $0x80] sm:$0xff] %v132_v55 }
  0xa8   :  { %203 = vst [vmem:[%s564_s3 + $0xc0] sm:$0xff] %v156_v56  ;;  %v86_v57 = vpop.f32.mrf.mxu0  ;;  %v110_v58 = vpop.f32.mrf.mxu1 }
  0xa9   :  { %v87_v59 = vadd.f32 %v431_v48, %v86_v57  ;;  %v111_v60 = vadd.f32 %v431_v48, %v110_v58 }
  0xab   :  { %180 = vst [vmem:[%s564_s3 + $0x8] sm:$0xff] %v87_v59 }
  0xac   :  { %188 = vst [vmem:[%s564_s3 + $0x48] sm:$0xff] %v111_v60  ;;  %v134_v61 = vpop.f32.mrf.mxu2  ;;  %v158_v62 = vpop.f32.mrf.mxu3 }
  0xad   :  { %v135_v63 = vadd.f32 %v431_v48, %v134_v61  ;;  %v159_v0 = vadd.f32 %v431_v48, %v158_v62 }
  0xaf   :  { %196 = vst [vmem:[%s564_s3 + $0x88] sm:$0xff] %v135_v63 }
  0xb0   :  { %204 = vst [vmem:[%s564_s3 + $0xc8] sm:$0xff] %v159_v0  ;;  %v89_v1 = vpop.f32.mrf.mxu0  ;;  %v113_v2 = vpop.f32.mrf.mxu1 }
  0xb1   :  { %v90_v3 = vadd.f32 %v431_v48, %v89_v1  ;;  %v114_v4 = vadd.f32 %v431_v48, %v113_v2 }
  0xb3   :  { %181 = vst [vmem:[%s564_s3 + $0x10] sm:$0xff] %v90_v3 }
  0xb4   :  { %189 = vst [vmem:[%s564_s3 + $0x50] sm:$0xff] %v114_v4  ;;  %v137_v5 = vpop.f32.mrf.mxu2  ;;  %v161_v6 = vpop.f32.mrf.mxu3 }
  0xb5   :  { %v138_v7 = vadd.f32 %v431_v48, %v137_v5  ;;  %v162_v8 = vadd.f32 %v431_v48, %v161_v6 }
  0xb7   :  { %197 = vst [vmem:[%s564_s3 + $0x90] sm:$0xff] %v138_v7 }
  0xb8   :  { %205 = vst [vmem:[%s564_s3 + $0xd0] sm:$0xff] %v162_v8  ;;  %v92_v9 = vpop.f32.mrf.mxu0  ;;  %v116_v10 = vpop.f32.mrf.mxu1 }
  0xb9   :  { %v93_v11 = vadd.f32 %v431_v48, %v92_v9  ;;  %v117_v12 = vadd.f32 %v431_v48, %v116_v10 }
  0xbb   :  { %182 = vst [vmem:[%s564_s3 + $0x18] sm:$0xff] %v93_v11 }
  0xbc   :  { %190 = vst [vmem:[%s564_s3 + $0x58] sm:$0xff] %v117_v12  ;;  %v140_v13 = vpop.f32.mrf.mxu2  ;;  %v164_v14 = vpop.f32.mrf.mxu3 }
  0xbd   :  { %v141_v15 = vadd.f32 %v431_v48, %v140_v13  ;;  %v165_v16 = vadd.f32 %v431_v48, %v164_v14 }
  0xbf   :  { %198 = vst [vmem:[%s564_s3 + $0x98] sm:$0xff] %v141_v15 }
  0xc0   :  { %206 = vst [vmem:[%s564_s3 + $0xd8] sm:$0xff] %v165_v16  ;;  %v95_v17 = vpop.f32.mrf.mxu0  ;;  %v119_v18 = vpop.f32.mrf.mxu1 }
  0xc1   :  { %v96_v19 = vadd.f32 %v431_v48, %v95_v17  ;;  %v120_v20 = vadd.f32 %v431_v48, %v119_v18 }
  0xc3   :  { %183 = vst [vmem:[%s564_s3 + $0x20] sm:$0xff] %v96_v19 }
  0xc4   :  { %191 = vst [vmem:[%s564_s3 + $0x60] sm:$0xff] %v120_v20  ;;  %v143_v21 = vpop.f32.mrf.mxu2  ;;  %v167_v22 = vpop.f32.mrf.mxu3 }
  0xc5   :  { %v144_v23 = vadd.f32 %v431_v48, %v143_v21  ;;  %v168_v24 = vadd.f32 %v431_v48, %v167_v22 }
  0xc7   :  { %199 = vst [vmem:[%s564_s3 + $0xa0] sm:$0xff] %v144_v23 }
  0xc8   :  { %207 = vst [vmem:[%s564_s3 + $0xe0] sm:$0xff] %v168_v24  ;;  %v98_v25 = vpop.f32.mrf.mxu0  ;;  %v122_v26 = vpop.f32.mrf.mxu1 }
  0xc9   :  { %v99_v27 = vadd.f32 %v431_v48, %v98_v25  ;;  %v123_v28 = vadd.f32 %v431_v48, %v122_v26 }
  0xcb   :  { %184 = vst [vmem:[%s564_s3 + $0x28] sm:$0xff] %v99_v27 }
  0xcc   :  { %192 = vst [vmem:[%s564_s3 + $0x68] sm:$0xff] %v123_v28  ;;  %v146_v29 = vpop.f32.mrf.mxu2  ;;  %v170_v30 = vpop.f32.mrf.mxu3 }
  0xcd   :  { %v147_v31 = vadd.f32 %v431_v48, %v146_v29  ;;  %v171_v32 = vadd.f32 %v431_v48, %v170_v30 }
  0xcf   :  { %200 = vst [vmem:[%s564_s3 + $0xa8] sm:$0xff] %v147_v31 }
  0xd0   :  { %208 = vst [vmem:[%s564_s3 + $0xe8] sm:$0xff] %v171_v32  ;;  %v101_v33 = vpop.f32.mrf.mxu0  ;;  %v125_v34 = vpop.f32.mrf.mxu1 }
  0xd1   :  { %v102_v35 = vadd.f32 %v431_v48, %v101_v33  ;;  %v126_v36 = vadd.f32 %v431_v48, %v125_v34 }
  0xd3   :  { %185 = vst [vmem:[%s564_s3 + $0x30] sm:$0xff] %v102_v35 }
  0xd4   :  { %193 = vst [vmem:[%s564_s3 + $0x70] sm:$0xff] %v126_v36  ;;  %v149_v37 = vpop.f32.mrf.mxu2  ;;  %v173_v38 = vpop.f32.mrf.mxu3 }
  0xd5   :  { %v150_v39 = vadd.f32 %v431_v48, %v149_v37  ;;  %v174_v40 = vadd.f32 %v431_v48, %v173_v38 }
  0xd7   :  { %201 = vst [vmem:[%s564_s3 + $0xb0] sm:$0xff] %v150_v39 }
  0xd8   :  { %209 = vst [vmem:[%s564_s3 + $0xf0] sm:$0xff] %v174_v40  ;;  %v104_v41 = vpop.f32.mrf.mxu0  ;;  %v128_v42 = vpop.f32.mrf.mxu1 }
  0xd9   :  { %v105_v43 = vadd.f32 %v431_v48, %v104_v41  ;;  %v129_v44 = vadd.f32 %v431_v48, %v128_v42 }
  0xdb   :  { %186 = vst [vmem:[%s564_s3 + $0x38] sm:$0xff] %v105_v43 }
  0xdc   :  { %194 = vst [vmem:[%s564_s3 + $0x78] sm:$0xff] %v129_v44  ;;  %v152_v45 = vpop.f32.mrf.mxu2  ;;  %v176_v46 = vpop.f32.mrf.mxu3 }
  0xdd   :  { %v153_v47 = vadd.f32 %v431_v48, %v152_v45  ;;  %v177_v49 = vadd.f32 %v431_v48, %v176_v46 }
  0xdf   :  { %202 = vst [vmem:[%s564_s3 + $0xb8] sm:$0xff] %v153_v47 }
  0xe0   :  { %210 = vst [vmem:[%s564_s3 + $0xf8] sm:$0xff] %v177_v49 }

</bundles_post_ra>
